<compile_context>
chip_gen: v7x
topology: tpu7x:2x2x1
jax: 0.10.0
libtpu: 0.0.40
codegen_flags: <defaults>
</compile_context>

<pallas_src>
import jax
import jax.numpy as jnp
from jax.experimental import pallas as pl
from jax.experimental.pallas import tpu as pltpu


def _flatten_dma_kernel(x_hbm_ref, o_hbm_ref, sem):
    # One direct HBM->HBM DMA of the entire (N, F) array.  No VMEM staging,
    # no tiling, no grid-step overhead — the DMA engine does all the work.
    copy = pltpu.make_async_copy(x_hbm_ref, o_hbm_ref, sem)
    copy.start()
    copy.wait()


def flatten(x):
    """Equivalent of torch Flatten.forward: x.view(x.size(0), -1)."""
    n = x.shape[0]
    f = 1
    for d in x.shape[1:]:
        f *= d

    # Row-major flatten (matches torch .view on a contiguous tensor) —
    # metadata-only reshape done in the wrapper.
    x2d = jnp.reshape(x, (n, f))

    if n == 0 or f == 0:
        return x2d

    itemsize = jnp.dtype(x.dtype).itemsize

    out = pl.pallas_call(
        _flatten_dma_kernel,
        out_shape=jax.ShapeDtypeStruct((n, f), x.dtype),
        in_specs=[pl.BlockSpec(memory_space=pl.ANY)],    # raw HBM ref, no auto-DMA
        out_specs=pl.BlockSpec(memory_space=pl.ANY),     # raw HBM ref, written by DMA
        scratch_shapes=[pltpu.SemaphoreType.DMA],        # completion semaphore
        cost_estimate=pl.CostEstimate(
            flops=0,
            transcendentals=0,
            bytes_accessed=2 * n * f * itemsize,         # one read + one write
        ),
    )(x2d)
    return out


if __name__ == "__main__":
    key = jax.random.PRNGKey(0)

    # Primary test: small NCHW shape (batch=2, C=4, 16x16).
    x = jax.random.normal(key, (2, 4, 16, 16), dtype=jnp.float32)
    y = flatten(x)
    jax.block_until_ready(y)
    ref = jnp.reshape(x, (x.shape[0], -1))
    assert y.shape == (2, 4 * 16 * 16), y.shape
    assert y.dtype == x.dtype
    assert bool(jnp.all(y == ref))

    # Secondary test: non-power-of-two feature dim (F = 3200), larger batch.
    key2 = jax.random.PRNGKey(1)
    x2 = jax.random.normal(key2, (8, 8, 20, 20), dtype=jnp.float32)
    y2 = flatten(x2)
    jax.block_until_ready(y2)
    ref2 = jnp.reshape(x2, (x2.shape[0], -1))
    assert y2.shape == (8, 8 * 20 * 20), y2.shape
    assert bool(jnp.all(y2 == ref2))

    # Tertiary test: packed dtype (bf16) and 3-D input.
    key3 = jax.random.PRNGKey(2)
    x3 = jax.random.normal(key3, (4, 8, 32), dtype=jnp.bfloat16)
    y3 = flatten(x3)
    jax.block_until_ready(y3)
    ref3 = jnp.reshape(x3, (x3.shape[0], -1))
    assert y3.shape == (4, 8 * 32), y3.shape
    assert y3.dtype == x3.dtype
    assert bool(jnp.all(y3 == ref3))

    print("KERNEL_OK")
</pallas_src>

<mosaic_0001>
module attributes {stable_mosaic.version = 11 : i64} {
  func.func @_flatten_dma_kernel(%arg0: memref<2x1024xf32, #tpu.memory_space<any>>, %arg1: memref<2x1024xf32, #tpu.memory_space<any>>, %arg2: memref<!tpu.dma_semaphore, #tpu.memory_space<semaphore_mem>>) attributes {dimension_semantics = [], scalar_prefetch = 0 : i64, scratch_operands = 1 : i64, tpu.core_type = #tpu.core_type<tc>} {
    tpu.enqueue_dma source(%arg0 : memref<2x1024xf32, #tpu.memory_space<any>>) target(%arg1 : memref<2x1024xf32, #tpu.memory_space<any>>) target_semaphore(%arg2 : memref<!tpu.dma_semaphore, #tpu.memory_space<semaphore_mem>>)
    tpu.wait_dma2 semaphore(%arg2 : memref<!tpu.dma_semaphore, #tpu.memory_space<semaphore_mem>>) src(%arg0 : memref<2x1024xf32, #tpu.memory_space<any>>) dst(%arg1 : memref<2x1024xf32, #tpu.memory_space<any>>)
    return
  }
}

</mosaic_0001>

<bundles_post_ra>
// kernel: tpu_custom_call.1
= control target key start
LH: loop header
LB: loop body
LE: loop exit
PB: predicated region body
PF: predicated region fallthrough
CT: control target
= control target key end

     0   :  { %s35_s6 = smov [#allocation2]   ;;  %s36_s7 = smov [#allocation3]   ;;  %s54_s0 = inlined_call_operand.hbm [shape: f32[2,1024], index: 0, kind: input, shape index: {}]   ;;  %s55_s1 = inlined_call_operand.hbm [shape: f32[2,1024], index: 1, kind: output, shape index: {}]  }
   0x1   :  { %s37_s8 = smov 0  }
   0x2   :  { %18 = dma.general %s54_s0, 256, %s55_s1, %s35_s6, %s36_s7, [#allocation4], %s37_s8, 0  }
   0x3   :  { %33 = dma.done.wait [#allocation2], 256 }
   0x4   :  { %34 = vsyncadd [#allocation2], 4294967040 }
   0x5   :  { %23 = vsyncmov [#allocation2] }
   0x8   :  { %s24_s13 = vpop.sfrf %23 }
   0x9   :  { %p29_p0 = scmp.ne.s32.totalorder %s24_s13, 0 }
   0xb   :  { %28 = shalt.err (%p29_p0)  }

</bundles_post_ra>
